<compile_context>
chip_gen: v6e
topology: v6e:2x2x1
jax: 0.10.0
libtpu: 0.0.40
codegen_flags: <defaults>
</compile_context>

<pallas_src>
import jax
import jax.numpy as jnp
from jax.experimental import pallas as pl
from jax.experimental.pallas import tpu as pltpu


def _round_up(n, m):
    return ((n + m - 1) // m) * m


def _cdiv(a, b):
    return (a + b - 1) // b


def nerf_mlp_kernel(x_ref, w1_ref, b1_ref, w2_ref, b2_ref, w3_ref, b3_ref, o_ref):
    # Fused cast: x arrives as raw f32 rows; cast to compute dtype in VMEM.
    x = x_ref[...].astype(w1_ref.dtype)                                   # (tm, 39)
    # layer1 + relu (f32 accumulate, f32 bias/relu)
    h = jnp.dot(x, w1_ref[...], preferred_element_type=jnp.float32) + b1_ref[...]
    h = jnp.maximum(h, 0.0).astype(w2_ref.dtype)
    # layer2 + relu
    h = jnp.dot(h, w2_ref[...], preferred_element_type=jnp.float32) + b2_ref[...]
    h = jnp.maximum(h, 0.0).astype(w3_ref.dtype)
    # layer3 (no activation): narrow (tm, 4) block, masked store is trivial vs. DMA
    out = jnp.dot(h, w3_ref[...], preferred_element_type=jnp.float32) + b3_ref[...]
    o_ref[...] = out.astype(o_ref.dtype)


def very_tiny_nerf_forward(x, params, *, tm=8192, compute_dtype=jnp.bfloat16):
    """x: (N, 39) float32. params: dict of w1,b1,w2,b2,w3,b3 (weights as (in, out)).

    Returns (N, 4) float32. Ragged N handled by bounded zero-padding of rows
    (padded rows compute inert garbage that is sliced off).
    """
    N, D_in = x.shape
    F = params["w1"].shape[1]
    D_out = params["w3"].shape[1]

    # Row tiling: 256-row quantum, balanced tiles (bounded dead-row waste), and at
    # least two grid steps when possible so v7x's two TensorCores both run.
    N_256 = _round_up(max(N, 256), 256)
    grid_n = _cdiv(N_256, tm)
    if grid_n == 1 and N_256 >= 512:
        grid_n = 2
    tm_eff = _round_up(_cdiv(N_256, grid_n), 256)
    N_pad = tm_eff * grid_n

    x_f32 = x.astype(jnp.float32)
    if N_pad != N:
        x_p = jnp.zeros((N_pad, D_in), jnp.float32).at[:N].set(x_f32)
    else:
        x_p = x_f32

    w1 = params["w1"].astype(compute_dtype)                      # (39, 128)
    b1 = params["b1"].astype(jnp.float32).reshape(1, F)
    w2 = params["w2"].astype(compute_dtype)                      # (128, 128)
    b2 = params["b2"].astype(jnp.float32).reshape(1, F)
    w3 = params["w3"].astype(compute_dtype)                      # (128, 4)
    b3 = params["b3"].astype(jnp.float32).reshape(1, D_out)

    # Weights/biases are tiny and constant across the grid: one resident VMEM copy.
    resident = pl.BlockSpec(memory_space=pltpu.MemorySpace.VMEM)

    flops = 2 * N_pad * (D_in * F + F * F + F * D_out)
    bytes_accessed = (
        x_p.size * x_p.dtype.itemsize            # input rows (read once)
        + N_pad * D_out * 4                      # narrow f32 output
        + sum(int(a.size) * a.dtype.itemsize for a in (w1, b1, w2, b2, w3, b3))
    )

    out = pl.pallas_call(
        nerf_mlp_kernel,
        out_shape=jax.ShapeDtypeStruct((N_pad, D_out), jnp.float32),
        grid_spec=pltpu.PrefetchScalarGridSpec(
            num_scalar_prefetch=0,
            grid=(grid_n,),
            in_specs=[
                pl.BlockSpec((tm_eff, D_in), lambda i: (i, 0)),  # x row tile (full 39 lanes)
                resident,  # w1 (39, 128)
                resident,  # b1 (1, 128)
                resident,  # w2 (128, 128)
                resident,  # b2 (1, 128)
                resident,  # w3 (128, 4)
                resident,  # b3 (1, 4)
            ],
            out_specs=pl.BlockSpec((tm_eff, D_out), lambda i: (i, 0)),
        ),
        compiler_params=pltpu.CompilerParams(
            dimension_semantics=("parallel",),
        ),
        cost_estimate=pl.CostEstimate(
            flops=flops, transcendentals=0, bytes_accessed=bytes_accessed),
    )(x_p, w1, b1, w2, b2, w3, b3)

    return out[:N] if N_pad != N else out


def init_params(key, filter_size=128, num_encoding_functions=6, dtype=jnp.float32):
    """Deterministic init mimicking torch.nn.Linear (uniform +-1/sqrt(fan_in)).
    Weights stored as (in_features, out_features) = transpose of PyTorch layout."""
    d_in = 3 + 3 * 2 * num_encoding_functions  # 39
    d_out = 4
    keys = jax.random.split(key, 6)

    def linear(kw, kb, fan_in, fan_out):
        bound = 1.0 / jnp.sqrt(float(fan_in))
        w = jax.random.uniform(kw, (fan_in, fan_out), dtype, -bound, bound)
        b = jax.random.uniform(kb, (1, fan_out), dtype, -bound, bound)
        return w, b

    w1, b1 = linear(keys[0], keys[1], d_in, filter_size)
    w2, b2 = linear(keys[2], keys[3], filter_size, filter_size)
    w3, b3 = linear(keys[4], keys[5], filter_size, d_out)
    return {"w1": w1, "b1": b1, "w2": w2, "b2": b2, "w3": w3, "b3": b3}


def reference_forward(x, p):
    h = jnp.maximum(x @ p["w1"] + p["b1"], 0.0)
    h = jnp.maximum(h @ p["w2"] + p["b2"], 0.0)
    return h @ p["w3"] + p["b3"]


if __name__ == "__main__":
    key = jax.random.PRNGKey(0)
    k_param, k_x = jax.random.split(key)

    filter_size = 128
    num_encoding_functions = 6
    d_in = 3 + 3 * 2 * num_encoding_functions  # 39

    params = init_params(k_param, filter_size, num_encoding_functions)

    N = 300  # deliberately ragged: exercises row padding and a 2-step grid
    x = jax.random.normal(k_x, (N, d_in), dtype=jnp.float32)

    ref = reference_forward(x, params)

    # f32 compute path: should match the reference tightly.
    out_f32 = jax.block_until_ready(
        very_tiny_nerf_forward(x, params, compute_dtype=jnp.float32))
    assert out_f32.shape == (N, 4)
    assert jnp.allclose(out_f32, ref, atol=1e-4, rtol=1e-4)

    # bf16 compute path (default perf config): downcasts x and weights, so tolerance
    # vs the f32 reference is intentionally loose.
    out_bf16 = jax.block_until_ready(very_tiny_nerf_forward(x, params))
    assert out_bf16.shape == (N, 4)
    assert jnp.allclose(out_bf16, ref, atol=5e-2, rtol=5e-2)

    print("KERNEL_OK")
</pallas_src>

<mosaic_0001>
module attributes {stable_mosaic.version = 11 : i64} {
  func.func @nerf_mlp_kernel(%arg0: i32, %arg1: memref<256x39xf32, #tpu.memory_space<vmem>>, %arg2: memref<39x128xf32, #tpu.memory_space<vmem>>, %arg3: memref<1x128xf32, #tpu.memory_space<vmem>>, %arg4: memref<128x128xf32, #tpu.memory_space<vmem>>, %arg5: memref<1x128xf32, #tpu.memory_space<vmem>>, %arg6: memref<128x4xf32, #tpu.memory_space<vmem>>, %arg7: memref<1x4xf32, #tpu.memory_space<vmem>>, %arg8: memref<256x4xf32, #tpu.memory_space<vmem>>) attributes {dimension_semantics = [#tpu.dimension_semantics<parallel>], iteration_bounds = array<i64: 2>, scalar_prefetch = 0 : i64, scratch_operands = 0 : i64, tpu.core_type = #tpu.core_type<tc>, window_params = [{transform_indices = @transform_0, window_bounds = array<i64: 256, 39>}, {pipeline_mode = #tpu.pipeline_mode<synchronous>, transform_indices = @transform_1, window_bounds = array<i64: 39, 128>}, {pipeline_mode = #tpu.pipeline_mode<synchronous>, transform_indices = @transform_2, window_bounds = array<i64: 1, 128>}, {pipeline_mode = #tpu.pipeline_mode<synchronous>, transform_indices = @transform_3, window_bounds = array<i64: 128, 128>}, {pipeline_mode = #tpu.pipeline_mode<synchronous>, transform_indices = @transform_4, window_bounds = array<i64: 1, 128>}, {pipeline_mode = #tpu.pipeline_mode<synchronous>, transform_indices = @transform_5, window_bounds = array<i64: 128, 4>}, {pipeline_mode = #tpu.pipeline_mode<synchronous>, transform_indices = @transform_6, window_bounds = array<i64: 1, 4>}, {transform_indices = @transform_7, window_bounds = array<i64: 256, 4>}]} {
    %c0 = arith.constant 0 : index
    %c0_0 = arith.constant 0 : index
    %0 = vector.load %arg1[%c0, %c0_0] : memref<256x39xf32, #tpu.memory_space<vmem>>, vector<256x39xf32>
    %c0_1 = arith.constant 0 : index
    %c0_2 = arith.constant 0 : index
    %1 = vector.load %arg2[%c0_1, %c0_2] : memref<39x128xf32, #tpu.memory_space<vmem>>, vector<39x128xf32>
    %cst = arith.constant dense<0.000000e+00> : vector<256x128xf32>
    %2 = tpu.matmul %0, %1, %cst {dimension_numbers = #tpu.dot_dimension_numbers<[1], [0], [0], [1], [0, 0, 1, 1], [], []>} : vector<256x39xf32>, vector<39x128xf32>, vector<256x128xf32> -> vector<256x128xf32>
    %c0_3 = arith.constant 0 : index
    %c0_4 = arith.constant 0 : index
    %3 = vector.load %arg3[%c0_3, %c0_4] : memref<1x128xf32, #tpu.memory_space<vmem>>, vector<1x128xf32>
    %4 = vector.broadcast %3 : vector<1x128xf32> to vector<256x128xf32>
    %5 = arith.addf %2, %4 : vector<256x128xf32>
    %cst_5 = arith.constant 0.000000e+00 : f32
    %6 = vector.broadcast %cst_5 : f32 to vector<256x128xf32>
    %7 = arith.maximumf %5, %6 : vector<256x128xf32>
    %c0_6 = arith.constant 0 : index
    %c0_7 = arith.constant 0 : index
    %8 = vector.load %arg4[%c0_6, %c0_7] : memref<128x128xf32, #tpu.memory_space<vmem>>, vector<128x128xf32>
    %cst_8 = arith.constant dense<0.000000e+00> : vector<256x128xf32>
    %9 = tpu.matmul %7, %8, %cst_8 {dimension_numbers = #tpu.dot_dimension_numbers<[1], [0], [0], [1], [0, 0, 1, 1], [], []>} : vector<256x128xf32>, vector<128x128xf32>, vector<256x128xf32> -> vector<256x128xf32>
    %c0_9 = arith.constant 0 : index
    %c0_10 = arith.constant 0 : index
    %10 = vector.load %arg5[%c0_9, %c0_10] : memref<1x128xf32, #tpu.memory_space<vmem>>, vector<1x128xf32>
    %11 = vector.broadcast %10 : vector<1x128xf32> to vector<256x128xf32>
    %12 = arith.addf %9, %11 : vector<256x128xf32>
    %cst_11 = arith.constant 0.000000e+00 : f32
    %13 = vector.broadcast %cst_11 : f32 to vector<256x128xf32>
    %14 = arith.maximumf %12, %13 : vector<256x128xf32>
    %c0_12 = arith.constant 0 : index
    %c0_13 = arith.constant 0 : index
    %15 = vector.load %arg6[%c0_12, %c0_13] : memref<128x4xf32, #tpu.memory_space<vmem>>, vector<128x4xf32>
    %cst_14 = arith.constant dense<0.000000e+00> : vector<256x4xf32>
    %16 = tpu.matmul %14, %15, %cst_14 {dimension_numbers = #tpu.dot_dimension_numbers<[1], [0], [0], [1], [0, 0, 1, 1], [], []>} : vector<256x128xf32>, vector<128x4xf32>, vector<256x4xf32> -> vector<256x4xf32>
    %c0_15 = arith.constant 0 : index
    %c0_16 = arith.constant 0 : index
    %17 = vector.load %arg7[%c0_15, %c0_16] : memref<1x4xf32, #tpu.memory_space<vmem>>, vector<1x4xf32>
    %18 = vector.broadcast %17 : vector<1x4xf32> to vector<256x4xf32>
    %19 = arith.addf %16, %18 : vector<256x4xf32>
    %c0_17 = arith.constant 0 : index
    %c0_18 = arith.constant 0 : index
    %20 = vector.load %arg8[%c0_17, %c0_18] : memref<256x4xf32, #tpu.memory_space<vmem>>, vector<256x4xf32>
    tpu.vector_store %arg8[%c0_17, %c0_18], %19 {strides = array<i32>} : memref<256x4xf32, #tpu.memory_space<vmem>>, vector<256x4xf32>,
    return
  }
  func.func @transform_0(%arg0: i32) -> (i32, i32) {
    %c0_i32 = arith.constant 0 : i32
    %c0_i32_0 = arith.constant 0 : i32
    return %arg0, %c0_i32 : i32, i32
  }
  func.func @transform_1(%arg0: i32) -> (i32, i32) {
    %c0_i32 = arith.constant 0 : i32
    %c0_i32_0 = arith.constant 0 : i32
    %c0_i32_1 = arith.constant 0 : i32
    return %c0_i32, %c0_i32_0 : i32, i32
  }
  func.func @transform_2(%arg0: i32) -> (i32, i32) {
    %c0_i32 = arith.constant 0 : i32
    %c0_i32_0 = arith.constant 0 : i32
    %c0_i32_1 = arith.constant 0 : i32
    return %c0_i32, %c0_i32_0 : i32, i32
  }
  func.func @transform_3(%arg0: i32) -> (i32, i32) {
    %c0_i32 = arith.constant 0 : i32
    %c0_i32_0 = arith.constant 0 : i32
    %c0_i32_1 = arith.constant 0 : i32
    return %c0_i32, %c0_i32_0 : i32, i32
  }
  func.func @transform_4(%arg0: i32) -> (i32, i32) {
    %c0_i32 = arith.constant 0 : i32
    %c0_i32_0 = arith.constant 0 : i32
    %c0_i32_1 = arith.constant 0 : i32
    return %c0_i32, %c0_i32_0 : i32, i32
  }
  func.func @transform_5(%arg0: i32) -> (i32, i32) {
    %c0_i32 = arith.constant 0 : i32
    %c0_i32_0 = arith.constant 0 : i32
    %c0_i32_1 = arith.constant 0 : i32
    return %c0_i32, %c0_i32_0 : i32, i32
  }
  func.func @transform_6(%arg0: i32) -> (i32, i32) {
    %c0_i32 = arith.constant 0 : i32
    %c0_i32_0 = arith.constant 0 : i32
    %c0_i32_1 = arith.constant 0 : i32
    return %c0_i32, %c0_i32_0 : i32, i32
  }
  func.func @transform_7(%arg0: i32) -> (i32, i32) {
    %c0_i32 = arith.constant 0 : i32
    %c0_i32_0 = arith.constant 0 : i32
    return %arg0, %c0_i32 : i32, i32
  }
}

</mosaic_0001>

<bundles_post_ra>
// kernel: tpu_custom_call.1
= control target key start
LH: loop header
LB: loop body
LE: loop exit
PB: predicated region body
PF: predicated region fallthrough
CT: control target
= control target key end

     0   :  { %s1765_s24 = smov 0   ;;  %s2152_s0 = inlined_call_operand.vmem [shape: f32[512,39], index: 0, kind: input, shape index: {}]   ;;  %s2153_s1 = inlined_call_operand.vmem [shape: f32[39,128], index: 1, kind: input, shape index: {}]   ;;  %s2154_s2 = inlined_call_operand.vmem [shape: f32[1,128], index: 2, kind: input, shape index: {}]   ;;  %s2155_s3 = inlined_call_operand.vmem [shape: f32[128,128], index: 3, kind: input, shape index: {}]   ;;  %s2156_s4 = inlined_call_operand.vmem [shape: f32[1,128], index: 4, kind: input, shape index: {}]   ;;  %s2157_s5 = inlined_call_operand.vmem [shape: f32[128,4], index: 5, kind: input, shape index: {}]   ;;  %s2158_s6 = inlined_call_operand.vmem [shape: f32[1,4], index: 6, kind: input, shape index: {}]   ;;  %s2159_s7 = inlined_call_operand.vmem [shape: f32[512,4], index: 7, kind: output, shape index: {}]  }
   0x1 LB: > { %s1301_s25 = sadd.s32 4294967295, %s1723_s24   ;;  %p1305_p0 = scmp.ge.s32.totalorder %s1723_s24, 1  ;;  %s1723_s24 = sphi %s1765_s24, %s17_s24  }
   0x2   : > { %p238_p1 = scmp.lt.s32.totalorder %s1723_s24, 3 }
   0x4   : > { %p239_p2 = pnand %p1305_p0, %p238_p1 }
   0x5   : > { %s1306_s30 = sshll.u32 (!%p239_p2), %s1301_s25, 5 }
   0x6   : > { %242 = sbr.rel (%p239_p2) target bundleno = 680 (0x2a8), region = 48  ;;  %p271_p3 = scmp.lt.s32.totalorder (!%p239_p2), %s1306_s30, 63 }
   0xb   : > { %v318_v0 = vld [vmem:[%s2153_s1 + $0x20] sm:$0x7f]  ;;  %vm423_vm0 = vcmask 1046528   ;;  %v317_v1 = vld [vmem:[%s2153_s1 + $0x18] sm:$0xff]  ;;  %v316_v2 = vld [vmem:[%s2153_s1 + $0x10] sm:$0xff]  ;;  %s2161_s30 = smov (!%p271_p3, %s1306_s30), 63 }
   0xc   : > { %1481 = vmatprep.subr.msk.mxu0 %vm423_vm0, %v318_v0  ;;  %1699 = vmatprep.subr.msk.mxu1 %vm423_vm0, %v318_v0  ;;  %v315_v3 = vld [vmem:[%s2153_s1 + $0x8] sm:$0xff]  ;;  %s1307_s12 = sshll.u32 %s2161_s30, 3  ;;  %vm326_vm1 = vcmask 318464   ;;  %v314_v4 = vld [vmem:[%s2153_s1] sm:$0xff]  ;;  %v699_v8 = vld [vmem:[%s2155_s3 + $0x78] sm:$0xff]  ;;  %vm1212_vm2 = vcmask 31744  }
   0xd   : > { %1482 = vmatpush3.msk.msra.mxu0 %vm423_vm0, %v318_v0  ;;  %1704 = vmatpush3.msk.msra.mxu1 %vm423_vm0, %v318_v0  ;;  %s1796_s17 = scalar_lea.vmem %s2152_s0, %s1307_s12  ;;  %v698_v14 = vld [vmem:[%s2155_s3 + $0x70] sm:$0xff]  ;;  %v697_v19 = vld [vmem:[%s2155_s3 + $0x68] sm:$0xff]  ;;  %v696_v24 = vld [vmem:[%s2155_s3 + $0x60] sm:$0xff]  ;;  %s2051_s9 = scalar_lea.vmem %s2159_s7, %s1307_s12 }
   0xe   : > { %1483 = vmatprep.subr.mxu0 %v317_v1  ;;  %1700 = vmatprep.subr.mxu1 %v317_v1  ;;  %v282_v5 = vld [vmem:[%s1796_s17] sm:$0xff]  ;;  %v283_v6 = vld [vmem:[%s1796_s17 + $0x8] sm:$0xff]  ;;  %v284_v7 = vld [vmem:[%s1796_s17 + $0x10] sm:$0xff] }
   0xf   : > { %1484 = vmatpush3.msra.mxu0 %v317_v1  ;;  %1705 = vmatpush3.msra.mxu1 %v317_v1  ;;  %v285_v9 = vld [vmem:[%s1796_s17 + $0x18] sm:$0xff]  ;;  %v298_v10 = vld [vmem:[%s1796_s17 + $0x80] sm:$0xff]  ;;  %v299_v11 = vld [vmem:[%s1796_s17 + $0x88] sm:$0xff] }
  0x10   : > { %1485 = vmatprep.subr.mxu0 %v316_v2  ;;  %1701 = vmatprep.subr.mxu1 %v316_v2  ;;  %v286_v12 = vld [vmem:[%s1796_s17 + $0x20] sm:$0xff]  ;;  %v300_v13 = vld [vmem:[%s1796_s17 + $0x90] sm:$0xff]  ;;  %v301_v15 = vld [vmem:[%s1796_s17 + $0x98] sm:$0xff] }
  0x11   : > { %1486 = vmatpush3.msra.mxu0 %v316_v2  ;;  %1706 = vmatpush3.msra.mxu1 %v316_v2  ;;  %v287_v16 = vld [vmem:[%s1796_s17 + $0x28] sm:$0xff]  ;;  %v302_v17 = vld [vmem:[%s1796_s17 + $0xa0] sm:$0xff]  ;;  %v288_v18 = vld [vmem:[%s1796_s17 + $0x30] sm:$0xff] }
  0x12   : > { %1487 = vmatprep.subr.mxu0 %v315_v3  ;;  %1702 = vmatprep.subr.mxu1 %v315_v3  ;;  %v303_v20 = vld [vmem:[%s1796_s17 + $0xa8] sm:$0xff]  ;;  %v289_v21 = vld [vmem:[%s1796_s17 + $0x38] sm:$0xff]  ;;  %v304_v22 = vld [vmem:[%s1796_s17 + $0xb0] sm:$0xff] }
  0x13   : > { %1488 = vmatpush3.msra.mxu0 %v315_v3  ;;  %1491 = vmatprep.mubr.msk.f32.mxu0 %vm326_vm1, %v282_v5  ;;  %v290_v23 = vld [vmem:[%s1796_s17 + $0x40] sm:$0xff]  ;;  %v305_v25 = vld [vmem:[%s1796_s17 + $0xb8] sm:$0xff]  ;;  %v291_v26 = vld [vmem:[%s1796_s17 + $0x48] sm:$0xff] }
  0x14   : > { %1489 = vmatprep.subr.mxu0 %v314_v4  ;;  %1707 = vmatpush3.msra.mxu1 %v315_v3  ;;  %v306_v27 = vld [vmem:[%s1796_s17 + $0xc0] sm:$0xff]  ;;  %v292_v28 = vld [vmem:[%s1796_s17 + $0x50] sm:$0xff]  ;;  %v695_v29 = vld [vmem:[%s2155_s3 + $0x58] sm:$0xff] }
  0x15   : > { %1490 = vmatpush3.msra.mxu0 %v314_v4  ;;  %1703 = vmatprep.subr.mxu1 %v314_v4  ;;  %v307_v30 = vld [vmem:[%s1796_s17 + $0xc8] sm:$0xff]  ;;  %v293_v31 = vld [vmem:[%s1796_s17 + $0x58] sm:$0xff]  ;;  %v308_v32 = vld [vmem:[%s1796_s17 + $0xd0] sm:$0xff] }
  0x16   : > { %1492 = vmatmul.mubr.msk.f32.vlgmr.msra.gmra.mxu0 %vm326_vm1, %v283_v6  ;;  %1708 = vmatpush3.msra.mxu1 %v314_v4  ;;  %v294_v33 = vld [vmem:[%s1796_s17 + $0x60] sm:$0xff]  ;;  %v694_v34 = vld [vmem:[%s2155_s3 + $0x50] sm:$0xff]  ;;  %v309_v35 = vld [vmem:[%s1796_s17 + $0xd8] sm:$0xff] }
  0x17   : > { %1494 = vmatprep.mubr.msk.f32.mxu0 %vm326_vm1, %v284_v7  ;;  %1539 = vmatprep.subr.mxu1 %v699_v8  ;;  %v295_v36 = vld [vmem:[%s1796_s17 + $0x68] sm:$0xff]  ;;  %v310_v37 = vld [vmem:[%s1796_s17 + $0xe0] sm:$0xff]  ;;  %v296_v38 = vld [vmem:[%s1796_s17 + $0x70] sm:$0xff] }
  0x18   : > { %1515 = vmatprep.mubr.msk.f32.mxu1 %vm326_vm1, %v298_v10  ;;  %v693_v39 = vld [vmem:[%s2155_s3 + $0x48] sm:$0xff]  ;;  %v297_v41 = vld [vmem:[%s1796_s17 + $0x78] sm:$0xff]  ;;  %v312_v42 = vld [vmem:[%s1796_s17 + $0xf0] sm:$0xff] }
  0x19   : > { %1516 = vmatmul.mubr.msk.f32.vlgmr.msra.gmra.mxu1 %vm326_vm1, %v299_v11  ;;  %v311_v40 = vld [vmem:[%s1796_s17 + $0xe8] sm:$0xff]  ;;  %v692_v43 = vld [vmem:[%s2155_s3 + $0x40] sm:$0xff]  ;;  %v313_v44 = vld [vmem:[%s1796_s17 + $0xf8] sm:$0xff] }
  0x1a   : > { %1495 = vmatmul.mubr.msk.f32.gmra.mxu0 %vm326_vm1, %v285_v9  ;;  %1518 = vmatprep.mubr.msk.f32.mxu1 %vm326_vm1, %v300_v13  ;;  %v691_v45 = vld [vmem:[%s2155_s3 + $0x38] sm:$0xff]  ;;  %v690_v46 = vld [vmem:[%s2155_s3 + $0x30] sm:$0xff]  ;;  %v689_v47 = vld [vmem:[%s2155_s3 + $0x28] sm:$0xff] }
  0x1b   : > { %1497 = vmatprep.mubr.msk.f32.mxu0 %vm326_vm1, %v286_v12  ;;  %1540 = vmatpush3.msra.mxu1 %v699_v8  ;;  %v688_v48 = vld [vmem:[%s2155_s3 + $0x20] sm:$0xff]  ;;  %v687_v49 = vld [vmem:[%s2155_s3 + $0x18] sm:$0xff]  ;;  %v686_v50 = vld [vmem:[%s2155_s3 + $0x10] sm:$0xff] }
  0x1c   : > { %1541 = vmatprep.subr.mxu1 %v698_v14  ;;  %v685_v51 = vld [vmem:[%s2155_s3 + $0x8] sm:$0xff]  ;;  %v684_v52 = vld [vmem:[%s2155_s3] sm:$0xff]  ;;  %v979_v53 = vld [vmem:[%s2157_s5 + $0x78] sm:$0xff] }
  0x1d   : > { %1519 = vmatmul.mubr.msk.f32.gmra.mxu1 %vm326_vm1, %v301_v15  ;;  %v978_v54 = vld [vmem:[%s2157_s5 + $0x70] sm:$0xff]  ;;  %1619 = vmatprep.subr.mxu0 %v979_v53  ;;  %v977_v55 = vld [vmem:[%s2157_s5 + $0x68] sm:$0xff]  ;;  %v976_v56 = vld [vmem:[%s2157_s5 + $0x60] sm:$0xff] }
  0x1e   : > { %1498 = vmatmul.mubr.msk.f32.gmra.mxu0 %vm326_vm1, %v287_v16  ;;  %1521 = vmatprep.mubr.msk.f32.mxu1 %vm326_vm1, %v302_v17  ;;  %v975_v57 = vld [vmem:[%s2157_s5 + $0x58] sm:$0xff]  ;;  %v974_v58 = vld [vmem:[%s2157_s5 + $0x50] sm:$0xff]  ;;  %v973_v59 = vld [vmem:[%s2157_s5 + $0x48] sm:$0xff] }
  0x1f   : > { %1500 = vmatprep.mubr.msk.f32.mxu0 %vm326_vm1, %v288_v18  ;;  %1542 = vmatpush3.msra.mxu1 %v698_v14  ;;  %v972_v60 = vld [vmem:[%s2157_s5 + $0x40] sm:$0xff]  ;;  %v971_v61 = vld [vmem:[%s2157_s5 + $0x38] sm:$0xff]  ;;  %v970_v62 = vld [vmem:[%s2157_s5 + $0x30] sm:$0xff] }
  0x20   : > { %1543 = vmatprep.subr.mxu1 %v697_v19  ;;  %1620 = vmatpush3.msra.mxu0 %v979_v53  ;;  %v969_v63 = vld [vmem:[%s2157_s5 + $0x28] sm:$0xff]  ;;  %v968_v0 = vld [vmem:[%s2157_s5 + $0x20] sm:$0xff]  ;;  %v967_v1 = vld [vmem:[%s2157_s5 + $0x18] sm:$0xff] }
  0x21   : > { %1522 = vmatmul.mubr.msk.f32.gmra.mxu1 %vm326_vm1, %v303_v20  ;;  %1621 = vmatprep.subr.mxu0 %v978_v54  ;;  %v1952_v2 = vld [vmem:[%s2154_s2] ss:$0 sm:$0xff] }
  0x22   : > { %1501 = vmatmul.mubr.msk.f32.gmra.mxu0 %vm326_vm1, %v289_v21  ;;  %1524 = vmatprep.mubr.msk.f32.mxu1 %vm326_vm1, %v304_v22 }
  0x23   : > { %1503 = vmatprep.mubr.msk.f32.mxu0 %vm326_vm1, %v290_v23  ;;  %1544 = vmatpush3.msra.mxu1 %v697_v19 }
  0x24   : > { %1545 = vmatprep.subr.mxu1 %v696_v24  ;;  %1622 = vmatpush3.msra.mxu0 %v978_v54 }
  0x25   : > { %1525 = vmatmul.mubr.msk.f32.gmra.mxu1 %vm326_vm1, %v305_v25  ;;  %1623 = vmatprep.subr.mxu0 %v977_v55 }
  0x26   : > { %1504 = vmatmul.mubr.msk.f32.gmra.mxu0 %vm326_vm1, %v291_v26  ;;  %1527 = vmatprep.mubr.msk.f32.mxu1 %vm326_vm1, %v306_v27 }
  0x27   : > { %1506 = vmatprep.mubr.msk.f32.mxu0 %vm326_vm1, %v292_v28  ;;  %1546 = vmatpush3.msra.mxu1 %v696_v24 }
  0x28   : > { %1547 = vmatprep.subr.mxu1 %v695_v29  ;;  %1624 = vmatpush3.msra.mxu0 %v977_v55 }
  0x29   : > { %1528 = vmatmul.mubr.msk.f32.gmra.mxu1 %vm326_vm1, %v307_v30  ;;  %1625 = vmatprep.subr.mxu0 %v976_v56 }
  0x2a   : > { %1507 = vmatmul.mubr.msk.f32.gmra.mxu0 %vm326_vm1, %v293_v31  ;;  %1530 = vmatprep.mubr.msk.f32.mxu1 %vm326_vm1, %v308_v32 }
  0x2b   : > { %1509 = vmatprep.mubr.msk.f32.mxu0 %vm326_vm1, %v294_v33  ;;  %1548 = vmatpush3.msra.mxu1 %v695_v29 }
  0x2c   : > { %1549 = vmatprep.subr.mxu1 %v694_v34  ;;  %1626 = vmatpush3.msra.mxu0 %v976_v56 }
  0x2d   : > { %1531 = vmatmul.mubr.msk.f32.gmra.mxu1 %vm326_vm1, %v309_v35  ;;  %1627 = vmatprep.subr.mxu0 %v975_v57 }
  0x2e   : > { %1510 = vmatmul.mubr.msk.f32.gmra.mxu0 %vm326_vm1, %v295_v36  ;;  %1533 = vmatprep.mubr.msk.f32.mxu1 %vm326_vm1, %v310_v37 }
  0x2f   : > { %1512 = vmatprep.mubr.msk.f32.mxu0 %vm326_vm1, %v296_v38  ;;  %1550 = vmatpush3.msra.mxu1 %v694_v34 }
  0x30   : > { %1551 = vmatprep.subr.mxu1 %v693_v39  ;;  %1628 = vmatpush3.msra.mxu0 %v975_v57 }
  0x31   : > { %1534 = vmatmul.mubr.msk.f32.gmra.mxu1 %vm326_vm1, %v311_v40  ;;  %1629 = vmatprep.subr.mxu0 %v974_v58 }
  0x32   : > { %1513 = vmatmul.mubr.msk.f32.gmra.mxu0 %vm326_vm1, %v297_v41  ;;  %1536 = vmatprep.mubr.msk.f32.mxu1 %vm326_vm1, %v312_v42 }
  0x33   : > { %1552 = vmatpush3.msra.mxu1 %v693_v39  ;;  %1630 = vmatpush3.msra.mxu0 %v974_v58 }
  0x34   : > { %1553 = vmatprep.subr.mxu1 %v692_v43  ;;  %1631 = vmatprep.subr.mxu0 %v973_v59 }
  0x35   : > { %1537 = vmatmul.mubr.msk.f32.gmra.mxu1 %vm326_vm1, %v313_v44  ;;  %1632 = vmatpush3.msra.mxu0 %v973_v59 }
  0x36   : > { %1554 = vmatpush3.msra.mxu1 %v692_v43  ;;  %1633 = vmatprep.subr.mxu0 %v972_v60 }
  0x37   : > { %1555 = vmatprep.subr.mxu1 %v691_v45  ;;  %1634 = vmatpush3.msra.mxu0 %v972_v60 }
  0x38   : > { %1556 = vmatpush3.msra.mxu1 %v691_v45  ;;  %1635 = vmatprep.subr.mxu0 %v971_v61 }
  0x39   : > { %1557 = vmatprep.subr.mxu1 %v690_v46  ;;  %1636 = vmatpush3.msra.mxu0 %v971_v61 }
  0x3a   : > { %1558 = vmatpush3.msra.mxu1 %v690_v46  ;;  %1637 = vmatprep.subr.mxu0 %v970_v62 }
  0x3b   : > { %1559 = vmatprep.subr.mxu1 %v689_v47  ;;  %1638 = vmatpush3.msra.mxu0 %v970_v62 }
  0x3c   : > { %1560 = vmatpush3.msra.mxu1 %v689_v47  ;;  %1639 = vmatprep.subr.mxu0 %v969_v63 }
  0x3d   : > { %1561 = vmatprep.subr.mxu1 %v688_v48  ;;  %1640 = vmatpush3.msra.mxu0 %v969_v63 }
  0x3e   : > { %1562 = vmatpush3.msra.mxu1 %v688_v48  ;;  %1641 = vmatprep.subr.mxu0 %v968_v0 }
  0x3f   : > { %1563 = vmatprep.subr.mxu1 %v687_v49  ;;  %1642 = vmatpush3.msra.mxu0 %v968_v0 }
  0x40   : > { %1564 = vmatpush3.msra.mxu1 %v687_v49  ;;  %1643 = vmatprep.subr.mxu0 %v967_v1 }
  0x41   : > { %1565 = vmatprep.subr.mxu1 %v686_v50  ;;  %1644 = vmatpush3.msra.mxu0 %v967_v1 }
  0x42   : > { %1566 = vmatpush3.msra.mxu1 %v686_v50 }
  0x43   : > { %1567 = vmatprep.subr.mxu1 %v685_v51 }
  0x44   : > { %1568 = vmatpush3.msra.mxu1 %v685_v51 }
  0x45   : > { %1569 = vmatprep.subr.mxu1 %v684_v52 }
  0x46   : > { %1570 = vmatpush3.msra.mxu1 %v684_v52 }
  0xd6   : > { %v1493_v3 = vpop.f32.mrf.mxu0 }
  0xd7   : > { %v499_v4 = vadd.f32 %v1493_v3, %v1952_v2 }
  0xd8   : > { %v493_v5 = vpop.f32.mrf.mxu0 }
  0xd9   : > { %v494_v6 = vadd.f32 %v1952_v2, %v493_v5  ;;  %v1956_v7 = vpop.f32.mrf.mxu1  ;;  %v653_v11 = vmax.f32 %v499_v4, 0.0 }
  0xda   : > { %v1496_v8 = vpop.f32.mrf.mxu0  ;;  %v579_v0 = vadd.f32 %v1956_v7, %v1952_v2 }
  0xdb   : > { %v652_v9 = vmax.f32 %v494_v6, 0.0  ;;  %v573_v10 = vpop.f32.mrf.mxu1  ;;  %v509_v12 = vadd.f32 %v1496_v8, %v1952_v2 }
  0xdc   : > { %v503_v13 = vpop.f32.mrf.mxu0  ;;  %v574_v54 = vadd.f32 %v1952_v2, %v573_v10  ;;  %v669_v5 = vmax.f32 %v579_v0, 0.0 }
  0xdd   : > { %v504_v14 = vadd.f32 %v1952_v2, %v503_v13  ;;  %1571 = vmatprep.mubr.f32.mxu1 %v652_v9  ;;  %v1960_v15 = vpop.f32.mrf.mxu1  ;;  %v655_v19 = vmax.f32 %v509_v12, 0.0 }
  0xde   : > { %v1499_v16 = vpop.f32.mrf.mxu0  ;;  %1572 = vmatmul.mubr.f32.vlgmr.msra.gmra.mxu1 %v653_v11  ;;  %v668_v61 = vmax.f32 %v574_v54, 0.0  ;;  %v589_v6 = vadd.f32 %v1960_v15, %v1952_v2 }
  0xdf   : > { %v654_v17 = vmax.f32 %v504_v14, 0.0  ;;  %v583_v18 = vpop.f32.mrf.mxu1  ;;  %v519_v20 = vadd.f32 %v1499_v16, %v1952_v2 }
  0xe0   : > { %v513_v21 = vpop.f32.mrf.mxu0  ;;  %v584_v62 = vadd.f32 %v1952_v2, %v583_v18  ;;  %v671_v11 = vmax.f32 %v589_v6, 0.0 }
  0xe1   : > { %v514_v22 = vadd.f32 %v1952_v2, %v513_v21  ;;  %1574 = vmatprep.mubr.f32.mxu1 %v654_v17  ;;  %v1964_v23 = vpop.f32.mrf.mxu1  ;;  %v657_v26 = vmax.f32 %v519_v20, 0.0 }
  0xe2   : > { %v1502_v24 = vpop.f32.mrf.mxu0  ;;  %1575 = vmatmul.mubr.f32.gmra.mxu1 %v655_v19  ;;  %v670_v3 = vmax.f32 %v584_v62, 0.0  ;;  %v599_v7 = vadd.f32 %v1964_v23, %v1952_v2 }
  0xe3   : > { %v656_v25 = vmax.f32 %v514_v22, 0.0  ;;  %v529_v27 = vadd.f32 %v1502_v24, %v1952_v2  ;;  %v593_v29 = vpop.f32.mrf.mxu1 }
  0xe4   : > { %v523_v28 = vpop.f32.mrf.mxu0  ;;  %v594_v4 = vadd.f32 %v1952_v2, %v593_v29  ;;  %v673_v16 = vmax.f32 %v599_v7, 0.0 }
  0xe5   : > { %v524_v30 = vadd.f32 %v1952_v2, %v523_v28  ;;  %1577 = vmatprep.mubr.f32.mxu1 %v656_v25  ;;  %v659_v33 = vmax.f32 %v529_v27, 0.0  ;;  %v1526_v36 = vpop.f32.mrf.mxu1 }
  0xe6   : > { %v1505_v31 = vpop.f32.mrf.mxu0  ;;  %1578 = vmatmul.mubr.f32.gmra.mxu1 %v657_v26  ;;  %v672_v9 = vmax.f32 %v594_v4, 0.0  ;;  %v609_v17 = vadd.f32 %v1526_v36, %v1952_v2  ;;  %v966_v36 = vld [vmem:[%s2157_s5 + $0x10] sm:$0xff] }
  0xe7   : > { %v658_v32 = vmax.f32 %v524_v30, 0.0  ;;  %v539_v34 = vadd.f32 %v1505_v31, %v1952_v2  ;;  %v603_v43 = vpop.f32.mrf.mxu1  ;;  %1645 = vmatprep.subr.mxu0 %v966_v36 }
  0xe8   : > { %v533_v35 = vpop.f32.mrf.mxu0  ;;  %v604_v10 = vadd.f32 %v1952_v2, %v603_v43  ;;  %v675_v20 = vmax.f32 %v609_v17, 0.0  ;;  %1646 = vmatpush3.msra.mxu0 %v966_v36 }
  0xe9   : > { %v534_v37 = vadd.f32 %v1952_v2, %v533_v35  ;;  %1580 = vmatprep.mubr.f32.mxu1 %v658_v32  ;;  %v661_v40 = vmax.f32 %v539_v34, 0.0  ;;  %v1529_v50 = vpop.f32.mrf.mxu1 }
  0xea   : > { %v1508_v38 = vpop.f32.mrf.mxu0  ;;  %1581 = vmatmul.mubr.f32.gmra.mxu1 %v659_v33  ;;  %v674_v13 = vmax.f32 %v604_v10, 0.0  ;;  %v619_v21 = vadd.f32 %v1529_v50, %v1952_v2 }
  0xeb   : > { %v660_v39 = vmax.f32 %v534_v37, 0.0  ;;  %v549_v41 = vadd.f32 %v1508_v38, %v1952_v2  ;;  %v613_v58 = vpop.f32.mrf.mxu1  ;;  %v965_v37 = vld [vmem:[%s2157_s5 + $0x8] sm:$0xff]  ;;  %v2007_v38 = vld [vmem:[%s2156_s4] ss:$0 sm:$0xff] }
  0xec   : > { %v543_v42 = vpop.f32.mrf.mxu0  ;;  %v614_v14 = vadd.f32 %v1952_v2, %v613_v58  ;;  %v677_v25 = vmax.f32 %v619_v21, 0.0  ;;  %1647 = vmatprep.subr.mxu0 %v965_v37 }
  0xed   : > { %v544_v44 = vadd.f32 %v1952_v2, %v543_v42  ;;  %1583 = vmatprep.mubr.f32.mxu1 %v660_v39  ;;  %v663_v47 = vmax.f32 %v549_v41, 0.0  ;;  %v1532_v1 = vpop.f32.mrf.mxu1  ;;  %1648 = vmatpush3.msra.mxu0 %v965_v37 }
  0xee   : > { %v1511_v45 = vpop.f32.mrf.mxu0  ;;  %1584 = vmatmul.mubr.f32.gmra.mxu1 %v661_v40  ;;  %v676_v18 = vmax.f32 %v614_v14, 0.0  ;;  %v629_v26 = vadd.f32 %v1532_v1, %v1952_v2 }
  0xef   : > { %v662_v46 = vmax.f32 %v544_v44, 0.0  ;;  %v559_v48 = vadd.f32 %v1511_v45, %v1952_v2  ;;  %v623_v8 = vpop.f32.mrf.mxu1 }
  0xf0   : > { %v553_v49 = vpop.f32.mrf.mxu0  ;;  %v624_v19 = vadd.f32 %v1952_v2, %v623_v8  ;;  %v679_v30 = vmax.f32 %v629_v26, 0.0 }
  0xf1   : > { %v554_v51 = vadd.f32 %v1952_v2, %v553_v49  ;;  %1586 = vmatprep.mubr.f32.mxu1 %v662_v46  ;;  %v665_v55 = vmax.f32 %v559_v48, 0.0  ;;  %v1535_v12 = vpop.f32.mrf.mxu1 }
  0xf2   : > { %v1514_v52 = vpop.f32.mrf.mxu0  ;;  %1587 = vmatmul.mubr.f32.gmra.mxu1 %v663_v47  ;;  %v678_v23 = vmax.f32 %v624_v19, 0.0  ;;  %v639_v31 = vadd.f32 %v1535_v12, %v1952_v2 }
  0xf3   : > { %v664_v53 = vmax.f32 %v554_v51, 0.0  ;;  %v569_v56 = vadd.f32 %v1514_v52, %v1952_v2  ;;  %v633_v15 = vpop.f32.mrf.mxu1 }
  0xf4   : > { %v563_v57 = vpop.f32.mrf.mxu0  ;;  %v634_v24 = vadd.f32 %v1952_v2, %v633_v15  ;;  %v681_v33 = vmax.f32 %v639_v31, 0.0 }
  0xf5   : > { %v564_v59 = vadd.f32 %v1952_v2, %v563_v57  ;;  %1589 = vmatprep.mubr.f32.mxu1 %v664_v53  ;;  %v667_v63 = vmax.f32 %v569_v56, 0.0  ;;  %v1538_v22 = vpop.f32.mrf.mxu1 }
  0xf6   : > { %1590 = vmatmul.mubr.f32.gmra.mxu1 %v665_v55  ;;  %v680_v28 = vmax.f32 %v634_v24, 0.0  ;;  %v649_v34 = vadd.f32 %v1538_v22, %v1952_v2 }
  0xf7   : > { %v666_v60 = vmax.f32 %v564_v59, 0.0  ;;  %v643_v27 = vpop.f32.mrf.mxu1 }
  0xf8   : > { %v644_v29 = vadd.f32 %v1952_v2, %v643_v27  ;;  %v683_v35 = vmax.f32 %v649_v34, 0.0  ;;  %v964_v2 = vld [vmem:[%s2157_s5] sm:$0xff] }
  0xf9   : > { %1592 = vmatprep.mubr.f32.mxu1 %v666_v60  ;;  %1649 = vmatprep.subr.mxu0 %v964_v2 }
  0xfa   : > { %1593 = vmatmul.mubr.f32.gmra.mxu1 %v667_v63  ;;  %v682_v32 = vmax.f32 %v644_v29, 0.0  ;;  %1650 = vmatpush3.msra.mxu0 %v964_v2 }
  0xfb   : > { %1595 = vmatprep.mubr.f32.mxu1 %v668_v61 }
  0xfe   : > { %1596 = vmatmul.mubr.f32.gmra.mxu1 %v669_v5 }
  0xff   : > { %1598 = vmatprep.mubr.f32.mxu1 %v670_v3 }
 0x102   : > { %1599 = vmatmul.mubr.f32.gmra.mxu1 %v671_v11 }
 0x103   : > { %1601 = vmatprep.mubr.f32.mxu1 %v672_v9 }
 0x106   : > { %1602 = vmatmul.mubr.f32.gmra.mxu1 %v673_v16 }
 0x107   : > { %1604 = vmatprep.mubr.f32.mxu1 %v674_v13 }
 0x10a   : > { %1605 = vmatmul.mubr.f32.gmra.mxu1 %v675_v20 }
 0x10b   : > { %1607 = vmatprep.mubr.f32.mxu1 %v676_v18 }
 0x10e   : > { %1608 = vmatmul.mubr.f32.gmra.mxu1 %v677_v25 }
 0x10f   : > { %1610 = vmatprep.mubr.f32.mxu1 %v678_v23 }
 0x112   : > { %1611 = vmatmul.mubr.f32.gmra.mxu1 %v679_v30 }
 0x113   : > { %1613 = vmatprep.mubr.f32.mxu1 %v680_v28 }
 0x116   : > { %1614 = vmatmul.mubr.f32.gmra.mxu1 %v681_v33 }
 0x117   : > { %1616 = vmatprep.mubr.f32.mxu1 %v682_v32 }
 0x11a   : > { %1617 = vmatmul.mubr.f32.gmra.mxu1 %v683_v35 }
 0x19e   : > { %v1573_v39 = vpop.f32.mrf.mxu1 }
 0x19f   : > { %v779_v40 = vadd.f32 %v1573_v39, %v2007_v38 }
 0x1a0   : > { %v773_v41 = vpop.f32.mrf.mxu1 }
 0x1a1   : > { %v774_v42 = vadd.f32 %v2007_v38, %v773_v41  ;;  %v933_v45 = vmax.f32 %v779_v40, 0.0 }
 0x1a2   : > { %v1576_v43 = vpop.f32.mrf.mxu1 }
 0x1a3   : > { %v932_v44 = vmax.f32 %v774_v42, 0.0  ;;  %v789_v46 = vadd.f32 %v1576_v43, %v2007_v38 }
 0x1a4   : > { %v783_v47 = vpop.f32.mrf.mxu1 }
 0x1a5   : > { %v784_v48 = vadd.f32 %v2007_v38, %v783_v47  ;;  %1651 = vmatprep.mubr.f32.mxu0 %v932_v44  ;;  %v935_v51 = vmax.f32 %v789_v46, 0.0 }
 0x1a6   : > { %v1579_v49 = vpop.f32.mrf.mxu1  ;;  %1652 = vmatmul.mubr.f32.vlgmr.msra.gmra.mxu0 %v933_v45 }
 0x1a7   : > { %v934_v50 = vmax.f32 %v784_v48, 0.0  ;;  %v799_v52 = vadd.f32 %v1579_v49, %v2007_v38 }
 0x1a8   : > { %v793_v53 = vpop.f32.mrf.mxu1 }
 0x1a9   : > { %v794_v54 = vadd.f32 %v2007_v38, %v793_v53  ;;  %1654 = vmatprep.mubr.f32.mxu0 %v934_v50  ;;  %v937_v57 = vmax.f32 %v799_v52, 0.0 }
 0x1aa   : > { %v1582_v55 = vpop.f32.mrf.mxu1  ;;  %1655 = vmatmul.mubr.f32.gmra.mxu0 %v935_v51 }
 0x1ab   : > { %v936_v56 = vmax.f32 %v794_v54, 0.0  ;;  %v809_v58 = vadd.f32 %v1582_v55, %v2007_v38 }
 0x1ac   : > { %v803_v59 = vpop.f32.mrf.mxu1 }
 0x1ad   : > { %v804_v60 = vadd.f32 %v2007_v38, %v803_v59  ;;  %1657 = vmatprep.mubr.f32.mxu0 %v936_v56  ;;  %v939_v63 = vmax.f32 %v809_v58, 0.0 }
 0x1ae   : > { %v1585_v61 = vpop.f32.mrf.mxu1  ;;  %1658 = vmatmul.mubr.f32.gmra.mxu0 %v937_v57 }
 0x1af   : > { %v938_v62 = vmax.f32 %v804_v60, 0.0  ;;  %v819_v0 = vadd.f32 %v1585_v61, %v2007_v38 }
 0x1b0   : > { %v813_v1 = vpop.f32.mrf.mxu1 }
 0x1b1   : > { %v814_v3 = vadd.f32 %v2007_v38, %v813_v1  ;;  %1660 = vmatprep.mubr.f32.mxu0 %v938_v62  ;;  %v941_v6 = vmax.f32 %v819_v0, 0.0 }
 0x1b2   : > { %v1588_v4 = vpop.f32.mrf.mxu1  ;;  %1661 = vmatmul.mubr.f32.gmra.mxu0 %v939_v63 }
 0x1b3   : > { %v940_v5 = vmax.f32 %v814_v3, 0.0  ;;  %v829_v8 = vadd.f32 %v1588_v4, %v2007_v38 }
 0x1b4   : > { %v823_v9 = vpop.f32.mrf.mxu1 }
 0x1b5   : > { %v824_v10 = vadd.f32 %v2007_v38, %v823_v9  ;;  %1663 = vmatprep.mubr.f32.mxu0 %v940_v5  ;;  %v943_v12 = vmax.f32 %v829_v8, 0.0 }
 0x1b6   : > { %v1591_v11 = vpop.f32.mrf.mxu1  ;;  %1664 = vmatmul.mubr.f32.gmra.mxu0 %v941_v6 }
 0x1b7   : > { %v942_v7 = vmax.f32 %v824_v10, 0.0  ;;  %v839_v13 = vadd.f32 %v1591_v11, %v2007_v38  ;;  %v2044_v10 = vld [vmem:[%s2158_s6] ss:$0 sm:$0xff] }
 0x1b8   : > { %v833_v14 = vpop.f32.mrf.mxu1 }
 0x1b9   : > { %v834_v16 = vadd.f32 %v2007_v38, %v833_v14  ;;  %1666 = vmatprep.mubr.f32.mxu0 %v942_v7  ;;  %v945_v18 = vmax.f32 %v839_v13, 0.0 }
 0x1ba   : > { %v1594_v17 = vpop.f32.mrf.mxu1  ;;  %1667 = vmatmul.mubr.f32.gmra.mxu0 %v943_v12 }
 0x1bb   : > { %v944_v15 = vmax.f32 %v834_v16, 0.0  ;;  %v849_v19 = vadd.f32 %v1594_v17, %v2007_v38 }
 0x1bc   : > { %v843_v20 = vpop.f32.mrf.mxu1 }
 0x1bd   : > { %v844_v21 = vadd.f32 %v2007_v38, %v843_v20  ;;  %1669 = vmatprep.mubr.f32.mxu0 %v944_v15  ;;  %v947_v24 = vmax.f32 %v849_v19, 0.0 }
 0x1be   : > { %v1597_v22 = vpop.f32.mrf.mxu1  ;;  %1670 = vmatmul.mubr.f32.gmra.mxu0 %v945_v18 }
 0x1bf   : > { %v946_v23 = vmax.f32 %v844_v21, 0.0  ;;  %v859_v25 = vadd.f32 %v1597_v22, %v2007_v38 }
 0x1c0   : > { %v853_v26 = vpop.f32.mrf.mxu1 }
 0x1c1   : > { %v854_v27 = vadd.f32 %v2007_v38, %v853_v26  ;;  %1672 = vmatprep.mubr.f32.mxu0 %v946_v23  ;;  %v949_v30 = vmax.f32 %v859_v25, 0.0 }
 0x1c2   : > { %v1600_v28 = vpop.f32.mrf.mxu1  ;;  %1673 = vmatmul.mubr.f32.gmra.mxu0 %v947_v24 }
 0x1c3   : > { %v948_v29 = vmax.f32 %v854_v27, 0.0  ;;  %v869_v31 = vadd.f32 %v1600_v28, %v2007_v38 }
 0x1c4   : > { %v863_v32 = vpop.f32.mrf.mxu1 }
 0x1c5   : > { %v864_v33 = vadd.f32 %v2007_v38, %v863_v32  ;;  %1675 = vmatprep.mubr.f32.mxu0 %v948_v29  ;;  %v951_v36 = vmax.f32 %v869_v31, 0.0 }
 0x1c6   : > { %v1603_v34 = vpop.f32.mrf.mxu1  ;;  %1676 = vmatmul.mubr.f32.gmra.mxu0 %v949_v30 }
 0x1c7   : > { %v950_v35 = vmax.f32 %v864_v33, 0.0  ;;  %v879_v37 = vadd.f32 %v1603_v34, %v2007_v38 }
 0x1c8   : > { %v873_v2 = vpop.f32.mrf.mxu1 }
 0x1c9   : > { %v874_v39 = vadd.f32 %v2007_v38, %v873_v2  ;;  %1678 = vmatprep.mubr.f32.mxu0 %v950_v35  ;;  %v953_v42 = vmax.f32 %v879_v37, 0.0 }
 0x1ca   : > { %v1606_v40 = vpop.f32.mrf.mxu1  ;;  %1679 = vmatmul.mubr.f32.gmra.mxu0 %v951_v36 }
 0x1cb   : > { %v952_v41 = vmax.f32 %v874_v39, 0.0  ;;  %v889_v43 = vadd.f32 %v1606_v40, %v2007_v38 }
 0x1cc   : > { %v883_v44 = vpop.f32.mrf.mxu1 }
 0x1cd   : > { %v884_v45 = vadd.f32 %v2007_v38, %v883_v44  ;;  %1681 = vmatprep.mubr.f32.mxu0 %v952_v41  ;;  %v955_v48 = vmax.f32 %v889_v43, 0.0 }
 0x1ce   : > { %v1609_v46 = vpop.f32.mrf.mxu1  ;;  %1682 = vmatmul.mubr.f32.gmra.mxu0 %v953_v42 }
 0x1cf   : > { %v954_v47 = vmax.f32 %v884_v45, 0.0  ;;  %v899_v49 = vadd.f32 %v1609_v46, %v2007_v38 }
 0x1d0   : > { %v893_v50 = vpop.f32.mrf.mxu1 }
 0x1d1   : > { %v894_v51 = vadd.f32 %v2007_v38, %v893_v50  ;;  %1684 = vmatprep.mubr.f32.mxu0 %v954_v47  ;;  %v957_v54 = vmax.f32 %v899_v49, 0.0 }
 0x1d2   : > { %v1612_v52 = vpop.f32.mrf.mxu1  ;;  %1685 = vmatmul.mubr.f32.gmra.mxu0 %v955_v48 }
 0x1d3   : > { %v956_v53 = vmax.f32 %v894_v51, 0.0  ;;  %v909_v55 = vadd.f32 %v1612_v52, %v2007_v38 }
 0x1d4   : > { %v903_v56 = vpop.f32.mrf.mxu1 }
 0x1d5   : > { %v904_v57 = vadd.f32 %v2007_v38, %v903_v56  ;;  %1687 = vmatprep.mubr.f32.mxu0 %v956_v53  ;;  %v959_v60 = vmax.f32 %v909_v55, 0.0 }
 0x1d6   : > { %v1615_v58 = vpop.f32.mrf.mxu1  ;;  %1688 = vmatmul.mubr.f32.gmra.mxu0 %v957_v54 }
 0x1d7   : > { %v958_v59 = vmax.f32 %v904_v57, 0.0  ;;  %v919_v61 = vadd.f32 %v1615_v58, %v2007_v38 }
 0x1d8   : > { %v913_v62 = vpop.f32.mrf.mxu1 }
 0x1d9   : > { %v914_v63 = vadd.f32 %v2007_v38, %v913_v62  ;;  %1690 = vmatprep.mubr.f32.mxu0 %v958_v59  ;;  %v961_v3 = vmax.f32 %v919_v61, 0.0 }
 0x1da   : > { %v1618_v0 = vpop.f32.mrf.mxu1  ;;  %1691 = vmatmul.mubr.f32.gmra.mxu0 %v959_v60 }
 0x1db   : > { %v960_v1 = vmax.f32 %v914_v63, 0.0  ;;  %v929_v4 = vadd.f32 %v1618_v0, %v2007_v38 }
 0x1dc   : > { %v923_v5 = vpop.f32.mrf.mxu1 }
 0x1dd   : > { %v924_v6 = vadd.f32 %v2007_v38, %v923_v5  ;;  %1693 = vmatprep.mubr.f32.mxu0 %v960_v1  ;;  %v963_v9 = vmax.f32 %v929_v4, 0.0 }
 0x1de   : > { %1694 = vmatmul.mubr.f32.gmra.mxu0 %v961_v3 }
 0x1df   : > { %v962_v8 = vmax.f32 %v924_v6, 0.0 }
 0x1e1   : > { %1696 = vmatprep.mubr.f32.mxu0 %v962_v8 }
 0x1e2   : > { %1697 = vmatmul.mubr.f32.gmra.mxu0 %v963_v9 }
 0x266   : > { %v1653_v38 = vpop.f32.mrf.mxu0 }
 0x267   : > { %v1059_v11 = vadd.f32 %v1653_v38, %v2044_v10 }
 0x268   : > { %v1053_v7 = vpop.f32.mrf.mxu0 }
 0x269   : > { %1214 = vst.msk [vmem:[%s2051_s9 + $0x8] sm:$0xff] %vm1212_vm2, %v1059_v11  ;;  %v1054_v12 = vadd.f32 %v2044_v10, %v1053_v7 }
 0x26a   : > { %v1656_v13 = vpop.f32.mrf.mxu0 }
 0x26b   : > { %1213 = vst.msk [vmem:[%s2051_s9] sm:$0xff] %vm1212_vm2, %v1054_v12  ;;  %v1069_v14 = vadd.f32 %v1656_v13, %v2044_v10 }
 0x26c   : > { %v1063_v16 = vpop.f32.mrf.mxu0 }
 0x26d   : > { %1216 = vst.msk [vmem:[%s2051_s9 + $0x18] sm:$0xff] %vm1212_vm2, %v1069_v14  ;;  %v1064_v17 = vadd.f32 %v2044_v10, %v1063_v16 }
 0x26e   : > { %v1659_v15 = vpop.f32.mrf.mxu0 }
 0x26f   : > { %1215 = vst.msk [vmem:[%s2051_s9 + $0x10] sm:$0xff] %vm1212_vm2, %v1064_v17  ;;  %v1079_v18 = vadd.f32 %v1659_v15, %v2044_v10 }
 0x270   : > { %v1073_v19 = vpop.f32.mrf.mxu0 }
 0x271   : > { %1218 = vst.msk [vmem:[%s2051_s9 + $0x28] sm:$0xff] %vm1212_vm2, %v1079_v18  ;;  %v1074_v20 = vadd.f32 %v2044_v10, %v1073_v19 }
 0x272   : > { %v1662_v21 = vpop.f32.mrf.mxu0 }
 0x273   : > { %1217 = vst.msk [vmem:[%s2051_s9 + $0x20] sm:$0xff] %vm1212_vm2, %v1074_v20  ;;  %v1089_v22 = vadd.f32 %v1662_v21, %v2044_v10 }
 0x274   : > { %v1083_v23 = vpop.f32.mrf.mxu0 }
 0x275   : > { %1220 = vst.msk [vmem:[%s2051_s9 + $0x38] sm:$0xff] %vm1212_vm2, %v1089_v22  ;;  %v1084_v24 = vadd.f32 %v2044_v10, %v1083_v23 }
 0x276   : > { %v1665_v25 = vpop.f32.mrf.mxu0 }
 0x277   : > { %1219 = vst.msk [vmem:[%s2051_s9 + $0x30] sm:$0xff] %vm1212_vm2, %v1084_v24  ;;  %v1099_v26 = vadd.f32 %v1665_v25, %v2044_v10 }
 0x278   : > { %v1093_v27 = vpop.f32.mrf.mxu0 }
 0x279   : > { %1222 = vst.msk [vmem:[%s2051_s9 + $0x48] sm:$0xff] %vm1212_vm2, %v1099_v26  ;;  %v1094_v28 = vadd.f32 %v2044_v10, %v1093_v27 }
 0x27a   : > { %v1668_v29 = vpop.f32.mrf.mxu0 }
 0x27b   : > { %1221 = vst.msk [vmem:[%s2051_s9 + $0x40] sm:$0xff] %vm1212_vm2, %v1094_v28  ;;  %v1109_v30 = vadd.f32 %v1668_v29, %v2044_v10 }
 0x27c   : > { %v1103_v31 = vpop.f32.mrf.mxu0 }
 0x27d   : > { %1224 = vst.msk [vmem:[%s2051_s9 + $0x58] sm:$0xff] %vm1212_vm2, %v1109_v30  ;;  %v1104_v32 = vadd.f32 %v2044_v10, %v1103_v31 }
 0x27e   : > { %v1671_v33 = vpop.f32.mrf.mxu0 }
 0x27f   : > { %1223 = vst.msk [vmem:[%s2051_s9 + $0x50] sm:$0xff] %vm1212_vm2, %v1104_v32  ;;  %v1119_v34 = vadd.f32 %v1671_v33, %v2044_v10 }
 0x280   : > { %v1113_v35 = vpop.f32.mrf.mxu0 }
 0x281   : > { %1226 = vst.msk [vmem:[%s2051_s9 + $0x68] sm:$0xff] %vm1212_vm2, %v1119_v34  ;;  %v1114_v36 = vadd.f32 %v2044_v10, %v1113_v35 }
 0x282   : > { %v1674_v37 = vpop.f32.mrf.mxu0 }
 0x283   : > { %1225 = vst.msk [vmem:[%s2051_s9 + $0x60] sm:$0xff] %vm1212_vm2, %v1114_v36  ;;  %v1129_v2 = vadd.f32 %v1674_v37, %v2044_v10 }
 0x284   : > { %v1123_v39 = vpop.f32.mrf.mxu0 }
 0x285   : > { %1228 = vst.msk [vmem:[%s2051_s9 + $0x78] sm:$0xff] %vm1212_vm2, %v1129_v2  ;;  %v1124_v40 = vadd.f32 %v2044_v10, %v1123_v39 }
 0x286   : > { %v1677_v41 = vpop.f32.mrf.mxu0 }
 0x287   : > { %1227 = vst.msk [vmem:[%s2051_s9 + $0x70] sm:$0xff] %vm1212_vm2, %v1124_v40  ;;  %v1139_v42 = vadd.f32 %v1677_v41, %v2044_v10 }
 0x288   : > { %v1133_v43 = vpop.f32.mrf.mxu0 }
 0x289   : > { %1230 = vst.msk [vmem:[%s2051_s9 + $0x88] sm:$0xff] %vm1212_vm2, %v1139_v42  ;;  %v1134_v44 = vadd.f32 %v2044_v10, %v1133_v43 }
 0x28a   : > { %v1680_v45 = vpop.f32.mrf.mxu0 }
 0x28b   : > { %1229 = vst.msk [vmem:[%s2051_s9 + $0x80] sm:$0xff] %vm1212_vm2, %v1134_v44  ;;  %v1149_v46 = vadd.f32 %v1680_v45, %v2044_v10 }
 0x28c   : > { %v1143_v47 = vpop.f32.mrf.mxu0 }
 0x28d   : > { %1232 = vst.msk [vmem:[%s2051_s9 + $0x98] sm:$0xff] %vm1212_vm2, %v1149_v46  ;;  %v1144_v48 = vadd.f32 %v2044_v10, %v1143_v47 }
 0x28e   : > { %v1683_v49 = vpop.f32.mrf.mxu0 }
 0x28f   : > { %1231 = vst.msk [vmem:[%s2051_s9 + $0x90] sm:$0xff] %vm1212_vm2, %v1144_v48  ;;  %v1159_v50 = vadd.f32 %v1683_v49, %v2044_v10 }
 0x290   : > { %v1153_v51 = vpop.f32.mrf.mxu0 }
 0x291   : > { %1234 = vst.msk [vmem:[%s2051_s9 + $0xa8] sm:$0xff] %vm1212_vm2, %v1159_v50  ;;  %v1154_v52 = vadd.f32 %v2044_v10, %v1153_v51 }
 0x292   : > { %v1686_v53 = vpop.f32.mrf.mxu0 }
 0x293   : > { %1233 = vst.msk [vmem:[%s2051_s9 + $0xa0] sm:$0xff] %vm1212_vm2, %v1154_v52  ;;  %v1169_v54 = vadd.f32 %v1686_v53, %v2044_v10 }
 0x294   : > { %v1163_v55 = vpop.f32.mrf.mxu0 }
 0x295   : > { %1236 = vst.msk [vmem:[%s2051_s9 + $0xb8] sm:$0xff] %vm1212_vm2, %v1169_v54  ;;  %v1164_v56 = vadd.f32 %v2044_v10, %v1163_v55 }
 0x296   : > { %v1689_v57 = vpop.f32.mrf.mxu0 }
 0x297   : > { %1235 = vst.msk [vmem:[%s2051_s9 + $0xb0] sm:$0xff] %vm1212_vm2, %v1164_v56  ;;  %v1179_v58 = vadd.f32 %v1689_v57, %v2044_v10 }
 0x298   : > { %v1173_v59 = vpop.f32.mrf.mxu0 }
 0x299   : > { %1238 = vst.msk [vmem:[%s2051_s9 + $0xc8] sm:$0xff] %vm1212_vm2, %v1179_v58  ;;  %v1174_v60 = vadd.f32 %v2044_v10, %v1173_v59 }
 0x29a   : > { %v1692_v61 = vpop.f32.mrf.mxu0 }
 0x29b   : > { %1237 = vst.msk [vmem:[%s2051_s9 + $0xc0] sm:$0xff] %vm1212_vm2, %v1174_v60  ;;  %v1189_v62 = vadd.f32 %v1692_v61, %v2044_v10 }
 0x29c   : > { %v1183_v63 = vpop.f32.mrf.mxu0 }
 0x29d   : > { %1240 = vst.msk [vmem:[%s2051_s9 + $0xd8] sm:$0xff] %vm1212_vm2, %v1189_v62  ;;  %v1184_v0 = vadd.f32 %v2044_v10, %v1183_v63 }
 0x29e   : > { %v1695_v1 = vpop.f32.mrf.mxu0 }
 0x29f   : > { %1239 = vst.msk [vmem:[%s2051_s9 + $0xd0] sm:$0xff] %vm1212_vm2, %v1184_v0  ;;  %v1199_v3 = vadd.f32 %v1695_v1, %v2044_v10 }
 0x2a0   : > { %v1193_v4 = vpop.f32.mrf.mxu0 }
 0x2a1   : > { %1242 = vst.msk [vmem:[%s2051_s9 + $0xe8] sm:$0xff] %vm1212_vm2, %v1199_v3  ;;  %v1194_v5 = vadd.f32 %v2044_v10, %v1193_v4 }
 0x2a2   : > { %v1698_v6 = vpop.f32.mrf.mxu0 }
 0x2a3   : > { %1241 = vst.msk [vmem:[%s2051_s9 + $0xe0] sm:$0xff] %vm1212_vm2, %v1194_v5  ;;  %v1209_v8 = vadd.f32 %v1698_v6, %v2044_v10 }
 0x2a4   : > { %v1203_v9 = vpop.f32.mrf.mxu0 }
 0x2a5   : > { %1244 = vst.msk [vmem:[%s2051_s9 + $0xf8] sm:$0xff] %vm1212_vm2, %v1209_v8  ;;  %v1204_v38 = vadd.f32 %v2044_v10, %v1203_v9 }
 0x2a7   : > { %1243 = vst.msk [vmem:[%s2051_s9 + $0xf0] sm:$0xff] %vm1212_vm2, %v1204_v38 }
 0x2a8 PF: > { %s17_s24 = sadd.s32 1, %s1723_s24  }
 0x2a9   : > { %p14_p4 = scmp.ge.s32.totalorder %s17_s24, 4  }
 0x2ab   :  { %16 = sbr.rel (!%p14_p4) target bundleno = 1 (0x1), region = 78 }

</bundles_post_ra>
